<compile_context>
chip_gen: v6e
topology: v6e:2x2x1
jax: 0.10.0
libtpu: 0.0.40
codegen_flags: <defaults>
</compile_context>

<pallas_src>
import jax
import jax.numpy as jnp
from jax.experimental import pallas as pl
from jax.experimental.pallas import tpu as pltpu

KSIZE = 3  # conv kernel size (padding=1, stride=1)


def speech_kernel(x_ref, w1_ref, b1_ref, w2_ref, b2_ref,
                  wf1_ref, bf1_ref, wf2_ref, bf2_ref, out_ref,
                  xpad_sc, h1pad_sc):
    # x_ref:    (B, Cin, T)   raw PyTorch NCL input
    # w1_ref:   (3*Cin, C1)   fused im2col conv1 weight      b1_ref: (1, C1)
    # w2_ref:   (3*C1, C2)    fused im2col conv2 weight      b2_ref: (1, C2)
    # wf1_ref:  (C2, F1)      bf1_ref: (1, F1)
    # wf2_ref:  (1, F1)       bf2_ref: (1, 1)
    # out_ref:  (B, 1)
    # xpad_sc:  (B, T+2, Cin) VMEM scratch, zero time boundaries (conv1 pad)
    # h1pad_sc: (B, T+2, C1)  VMEM scratch, zero time boundaries (conv2 pad)
    B, Cin, T = x_ref.shape
    C1 = b1_ref.shape[1]
    C2 = b2_ref.shape[1]
    inv_t = 1.0 / T  # trace-time constant

    # Channels-last relayout of the VMEM-resident tile (channels -> lane axis,
    # so both conv matmuls contract over the lane dimension).
    x = jnp.transpose(x_ref[...], (0, 2, 1))                           # (B, T, Cin)

    # conv1 padding=1: zero only the two boundary rows, sliced-store x into the
    # middle. The 3 conv taps are then static slices of the scratch.
    xpad_sc[:, 0:1, :] = jnp.zeros((B, 1, Cin), jnp.float32)
    xpad_sc[:, T + 1:T + 2, :] = jnp.zeros((B, 1, Cin), jnp.float32)
    xpad_sc[:, 1:T + 1, :] = x

    # ---- conv1: im2col over 3 taps -> single MXU matmul (contraction 3*Cin) ----
    xs_cat = jnp.concatenate(
        [xpad_sc[:, k:k + T, :] for k in range(KSIZE)], axis=-1
    ).reshape(B * T, KSIZE * Cin)                                      # (B*T, 3*Cin)
    h1 = jnp.dot(xs_cat, w1_ref[...], preferred_element_type=jnp.float32)
    h1 = jnp.maximum(h1 + b1_ref[...], 0.0).reshape(B, T, C1)

    # conv2 padding=1 via the same zero-boundary scratch trick
    h1pad_sc[:, 0:1, :] = jnp.zeros((B, 1, C1), jnp.float32)
    h1pad_sc[:, T + 1:T + 2, :] = jnp.zeros((B, 1, C1), jnp.float32)
    h1pad_sc[:, 1:T + 1, :] = h1

    # ---- conv2: im2col -> single MXU matmul (contraction 3*C1) ----
    hs_cat = jnp.concatenate(
        [h1pad_sc[:, k:k + T, :] for k in range(KSIZE)], axis=-1
    ).reshape(B * T, KSIZE * C1)                                       # (B*T, 3*C1)
    h2 = jnp.dot(hs_cat, w2_ref[...], preferred_element_type=jnp.float32)
    h2 = jnp.maximum(h2 + b2_ref[...], 0.0).reshape(B, T, C2)

    # ---- AdaptiveAvgPool1d(1).squeeze(-1): time-sum, 1/T as a constant ----
    pooled = jnp.sum(h2, axis=1) * inv_t                               # (B, C2)

    # ---- fc1 + ReLU (MXU) ----
    f1 = jnp.dot(pooled, wf1_ref[...], preferred_element_type=jnp.float32)
    f1 = jnp.maximum(f1 + bf1_ref[...], 0.0)                           # (B, F1)

    # ---- fc2: output width 1 -> VPU multiply + lane reduction (skip MXU) ----
    out = jnp.sum(f1 * wf2_ref[...], axis=-1, keepdims=True) + bf2_ref[...]
    out_ref[...] = out.astype(out_ref.dtype)                           # (B, 1)


def speech_model_forward(x_ncl, params):
    """x_ncl: (B, C_in, T) float32 (PyTorch Conv1d layout). Returns (B, 1)."""
    w1, b1, w2, b2, wf1, bf1, wf2, bf2 = params
    B, Cin, T = x_ncl.shape
    C1 = b1.shape[1]

    vmem = pl.BlockSpec(memory_space=pltpu.MemorySpace.VMEM)
    out = pl.pallas_call(
        speech_kernel,
        out_shape=jax.ShapeDtypeStruct((B, 1), jnp.float32),
        in_specs=[vmem] * 9,
        out_specs=vmem,
        scratch_shapes=[
            pltpu.VMEM((B, T + 2, Cin), jnp.float32),   # zero-padded x (channels-last)
            pltpu.VMEM((B, T + 2, C1), jnp.float32),    # zero-padded conv1 activations
        ],
    )(x_ncl, w1, b1, w2, b2, wf1, bf1, wf2, bf2)
    return out


def init_params(key, input_dim=13, c1=64, c2=128, f1=64):
    ks = jax.random.split(key, 8)

    def u(k, shape, fan_in):
        bound = 1.0 / jnp.sqrt(jnp.float32(fan_in))
        return jax.random.uniform(k, shape, jnp.float32, -bound, bound)

    # Conv weights stored pre-fused in im2col form: (K*Cin, Cout), tap-major
    # (rows [k*Cin:(k+1)*Cin] == PyTorch weight[:, :, k].T).
    w1 = u(ks[0], (KSIZE * input_dim, c1), input_dim * KSIZE)
    b1 = u(ks[1], (1, c1), input_dim * KSIZE)
    w2 = u(ks[2], (KSIZE * c1, c2), c1 * KSIZE)
    b2 = u(ks[3], (1, c2), c1 * KSIZE)
    # Linear weights stored as (in, out); fc2 weight as a (1, F1) row for VPU reduce.
    wf1 = u(ks[4], (c2, f1), c2)
    bf1 = u(ks[5], (1, f1), c2)
    wf2 = u(ks[6], (1, f1), f1)
    bf2 = u(ks[7], (1, 1), f1)
    return (w1, b1, w2, b2, wf1, bf1, wf2, bf2)


def reference_forward(x_ncl, params):
    """Pure-JAX reference mirroring the PyTorch forward exactly."""
    w1, b1, w2, b2, wf1, bf1, wf2, bf2 = params
    B, Cin, T = x_ncl.shape
    C1 = b1.shape[1]
    C2 = b2.shape[1]
    # Unfuse im2col weights back to PyTorch (Cout, Cin, K) conv layout.
    k1 = jnp.transpose(w1.reshape(KSIZE, Cin, C1), (2, 1, 0))
    k2 = jnp.transpose(w2.reshape(KSIZE, C1, C2), (2, 1, 0))
    dn = ("NCH", "OIH", "NCH")
    y = jax.lax.conv_general_dilated(x_ncl, k1, (1,), ((1, 1),), dimension_numbers=dn)
    y = jax.nn.relu(y + b1.reshape(1, -1, 1))
    y = jax.lax.conv_general_dilated(y, k2, (1,), ((1, 1),), dimension_numbers=dn)
    y = jax.nn.relu(y + b2.reshape(1, -1, 1))
    y = jnp.mean(y, axis=-1)                 # AdaptiveAvgPool1d(1).squeeze(-1)
    y = jax.nn.relu(y @ wf1 + bf1)
    y = jnp.sum(y * wf2, axis=-1, keepdims=True) + bf2
    return y


if __name__ == "__main__":
    key = jax.random.PRNGKey(0)
    kx, kp = jax.random.split(key)

    B, Cin, T = 2, 13, 16
    x = jax.random.normal(kx, (B, Cin, T), jnp.float32)
    params = init_params(kp, input_dim=Cin)

    out = speech_model_forward(x, params)
    out = jax.block_until_ready(out)

    ref = reference_forward(x, params)
    assert out.shape == (B, 1), out.shape
    assert jnp.allclose(out, ref, atol=1e-3, rtol=1e-3), (out, ref)

    print("KERNEL_OK")
</pallas_src>

<mosaic_0001>
module attributes {stable_mosaic.version = 11 : i64} {
  func.func @speech_kernel(%arg0: memref<2x13x16xf32, #tpu.memory_space<vmem>>, %arg1: memref<39x64xf32, #tpu.memory_space<vmem>>, %arg2: memref<1x64xf32, #tpu.memory_space<vmem>>, %arg3: memref<192x128xf32, #tpu.memory_space<vmem>>, %arg4: memref<1x128xf32, #tpu.memory_space<vmem>>, %arg5: memref<128x64xf32, #tpu.memory_space<vmem>>, %arg6: memref<1x64xf32, #tpu.memory_space<vmem>>, %arg7: memref<1x64xf32, #tpu.memory_space<vmem>>, %arg8: memref<1x1xf32, #tpu.memory_space<vmem>>, %arg9: memref<2x1xf32, #tpu.memory_space<vmem>>, %arg10: memref<2x18x13xf32, #tpu.memory_space<vmem>>, %arg11: memref<2x18x64xf32, #tpu.memory_space<vmem>>) attributes {dimension_semantics = [], scalar_prefetch = 0 : i64, scratch_operands = 2 : i64, tpu.core_type = #tpu.core_type<tc>} {
    %c0 = arith.constant 0 : index
    %c0_0 = arith.constant 0 : index
    %c0_1 = arith.constant 0 : index
    %0 = vector.load %arg0[%c0, %c0_0, %c0_1] : memref<2x13x16xf32, #tpu.memory_space<vmem>>, vector<2x13x16xf32>
    %1 = tpu.transpose %0, [0, 2, 1] : vector<2x13x16xf32> -> vector<2x16x13xf32>
    %cst = arith.constant 0.000000e+00 : f32
    %2 = vector.broadcast %cst : f32 to vector<2x1x13xf32>
    %c0_2 = arith.constant 0 : index
    %c0_3 = arith.constant 0 : index
    %c0_4 = arith.constant 0 : index
    %3 = vector.load %arg10[%c0_2, %c0_3, %c0_4] : memref<2x18x13xf32, #tpu.memory_space<vmem>>, vector<2x1x13xf32>
    tpu.vector_store %arg10[%c0_2, %c0_3, %c0_4], %2 {strides = array<i32>} : memref<2x18x13xf32, #tpu.memory_space<vmem>>, vector<2x1x13xf32>,
    %cst_5 = arith.constant 0.000000e+00 : f32
    %4 = vector.broadcast %cst_5 : f32 to vector<2x1x13xf32>
    %c0_6 = arith.constant 0 : index
    %c17 = arith.constant 17 : index
    %c0_7 = arith.constant 0 : index
    %5 = vector.load %arg10[%c0_6, %c17, %c0_7] : memref<2x18x13xf32, #tpu.memory_space<vmem>>, vector<2x1x13xf32>
    tpu.vector_store %arg10[%c0_6, %c17, %c0_7], %4 {strides = array<i32>} : memref<2x18x13xf32, #tpu.memory_space<vmem>>, vector<2x1x13xf32>,
    %c0_8 = arith.constant 0 : index
    %c1 = arith.constant 1 : index
    %c0_9 = arith.constant 0 : index
    %6 = vector.load %arg10[%c0_8, %c1, %c0_9] : memref<2x18x13xf32, #tpu.memory_space<vmem>>, vector<2x16x13xf32>
    tpu.vector_store %arg10[%c0_8, %c1, %c0_9], %1 {strides = array<i32>} : memref<2x18x13xf32, #tpu.memory_space<vmem>>, vector<2x16x13xf32>,
    %c0_10 = arith.constant 0 : index
    %c0_11 = arith.constant 0 : index
    %c0_12 = arith.constant 0 : index
    %7 = vector.load %arg10[%c0_10, %c0_11, %c0_12] : memref<2x18x13xf32, #tpu.memory_space<vmem>>, vector<2x16x13xf32>
    %c0_13 = arith.constant 0 : index
    %c1_14 = arith.constant 1 : index
    %c0_15 = arith.constant 0 : index
    %8 = vector.load %arg10[%c0_13, %c1_14, %c0_15] : memref<2x18x13xf32, #tpu.memory_space<vmem>>, vector<2x16x13xf32>
    %c0_16 = arith.constant 0 : index
    %c2 = arith.constant 2 : index
    %c0_17 = arith.constant 0 : index
    %9 = vector.load %arg10[%c0_16, %c2, %c0_17] : memref<2x18x13xf32, #tpu.memory_space<vmem>>, vector<2x16x13xf32>
    %10 = tpu.concatenate %7, %8, %9 in 2 : vector<2x16x13xf32>, vector<2x16x13xf32>, vector<2x16x13xf32> -> vector<2x16x39xf32>
    %11 = vector.shape_cast %10 : vector<2x16x39xf32> to vector<32x39xf32>
    %c0_18 = arith.constant 0 : index
    %c0_19 = arith.constant 0 : index
    %12 = vector.load %arg1[%c0_18, %c0_19] : memref<39x64xf32, #tpu.memory_space<vmem>>, vector<39x64xf32>
    %cst_20 = arith.constant dense<0.000000e+00> : vector<32x64xf32>
    %13 = tpu.matmul %11, %12, %cst_20 {dimension_numbers = #tpu.dot_dimension_numbers<[1], [0], [0], [1], [0, 0, 1, 1], [], []>} : vector<32x39xf32>, vector<39x64xf32>, vector<32x64xf32> -> vector<32x64xf32>
    %c0_21 = arith.constant 0 : index
    %c0_22 = arith.constant 0 : index
    %14 = vector.load %arg2[%c0_21, %c0_22] : memref<1x64xf32, #tpu.memory_space<vmem>>, vector<1x64xf32>
    %15 = vector.broadcast %14 : vector<1x64xf32> to vector<32x64xf32>
    %16 = arith.addf %13, %15 : vector<32x64xf32>
    %cst_23 = arith.constant 0.000000e+00 : f32
    %17 = vector.broadcast %cst_23 : f32 to vector<32x64xf32>
    %18 = arith.maximumf %16, %17 : vector<32x64xf32>
    %19 = vector.shape_cast %18 : vector<32x64xf32> to vector<2x16x64xf32>
    %cst_24 = arith.constant 0.000000e+00 : f32
    %20 = vector.broadcast %cst_24 : f32 to vector<2x1x64xf32>
    %c0_25 = arith.constant 0 : index
    %c0_26 = arith.constant 0 : index
    %c0_27 = arith.constant 0 : index
    %21 = vector.load %arg11[%c0_25, %c0_26, %c0_27] : memref<2x18x64xf32, #tpu.memory_space<vmem>>, vector<2x1x64xf32>
    tpu.vector_store %arg11[%c0_25, %c0_26, %c0_27], %20 {strides = array<i32>} : memref<2x18x64xf32, #tpu.memory_space<vmem>>, vector<2x1x64xf32>,
    %cst_28 = arith.constant 0.000000e+00 : f32
    %22 = vector.broadcast %cst_28 : f32 to vector<2x1x64xf32>
    %c0_29 = arith.constant 0 : index
    %c17_30 = arith.constant 17 : index
    %c0_31 = arith.constant 0 : index
    %23 = vector.load %arg11[%c0_29, %c17_30, %c0_31] : memref<2x18x64xf32, #tpu.memory_space<vmem>>, vector<2x1x64xf32>
    tpu.vector_store %arg11[%c0_29, %c17_30, %c0_31], %22 {strides = array<i32>} : memref<2x18x64xf32, #tpu.memory_space<vmem>>, vector<2x1x64xf32>,
    %c0_32 = arith.constant 0 : index
    %c1_33 = arith.constant 1 : index
    %c0_34 = arith.constant 0 : index
    %24 = vector.load %arg11[%c0_32, %c1_33, %c0_34] : memref<2x18x64xf32, #tpu.memory_space<vmem>>, vector<2x16x64xf32>
    tpu.vector_store %arg11[%c0_32, %c1_33, %c0_34], %19 {strides = array<i32>} : memref<2x18x64xf32, #tpu.memory_space<vmem>>, vector<2x16x64xf32>,
    %c0_35 = arith.constant 0 : index
    %c0_36 = arith.constant 0 : index
    %c0_37 = arith.constant 0 : index
    %25 = vector.load %arg11[%c0_35, %c0_36, %c0_37] : memref<2x18x64xf32, #tpu.memory_space<vmem>>, vector<2x16x64xf32>
    %c0_38 = arith.constant 0 : index
    %c1_39 = arith.constant 1 : index
    %c0_40 = arith.constant 0 : index
    %26 = vector.load %arg11[%c0_38, %c1_39, %c0_40] : memref<2x18x64xf32, #tpu.memory_space<vmem>>, vector<2x16x64xf32>
    %c0_41 = arith.constant 0 : index
    %c2_42 = arith.constant 2 : index
    %c0_43 = arith.constant 0 : index
    %27 = vector.load %arg11[%c0_41, %c2_42, %c0_43] : memref<2x18x64xf32, #tpu.memory_space<vmem>>, vector<2x16x64xf32>
    %28 = tpu.concatenate %25, %26, %27 in 2 : vector<2x16x64xf32>, vector<2x16x64xf32>, vector<2x16x64xf32> -> vector<2x16x192xf32>
    %29 = vector.shape_cast %28 : vector<2x16x192xf32> to vector<32x192xf32>
    %c0_44 = arith.constant 0 : index
    %c0_45 = arith.constant 0 : index
    %30 = vector.load %arg3[%c0_44, %c0_45] : memref<192x128xf32, #tpu.memory_space<vmem>>, vector<192x128xf32>
    %cst_46 = arith.constant dense<0.000000e+00> : vector<32x128xf32>
    %31 = tpu.matmul %29, %30, %cst_46 {dimension_numbers = #tpu.dot_dimension_numbers<[1], [0], [0], [1], [0, 0, 1, 1], [], []>} : vector<32x192xf32>, vector<192x128xf32>, vector<32x128xf32> -> vector<32x128xf32>
    %c0_47 = arith.constant 0 : index
    %c0_48 = arith.constant 0 : index
    %32 = vector.load %arg4[%c0_47, %c0_48] : memref<1x128xf32, #tpu.memory_space<vmem>>, vector<1x128xf32>
    %33 = vector.broadcast %32 : vector<1x128xf32> to vector<32x128xf32>
    %34 = arith.addf %31, %33 : vector<32x128xf32>
    %cst_49 = arith.constant 0.000000e+00 : f32
    %35 = vector.broadcast %cst_49 : f32 to vector<32x128xf32>
    %36 = arith.maximumf %34, %35 : vector<32x128xf32>
    %37 = vector.shape_cast %36 : vector<32x128xf32> to vector<2x16x128xf32>
    %cst_50 = arith.constant dense<0.000000e+00> : vector<2x128xf32>
    %38 = vector.multi_reduction <add>, %37, %cst_50 [1] : vector<2x16x128xf32> to vector<2x128xf32>
    %cst_51 = arith.constant 6.250000e-02 : f32
    %39 = vector.broadcast %cst_51 : f32 to vector<2x128xf32>
    %40 = arith.mulf %38, %39 : vector<2x128xf32>
    %c0_52 = arith.constant 0 : index
    %c0_53 = arith.constant 0 : index
    %41 = vector.load %arg5[%c0_52, %c0_53] : memref<128x64xf32, #tpu.memory_space<vmem>>, vector<128x64xf32>
    %cst_54 = arith.constant dense<0.000000e+00> : vector<2x64xf32>
    %42 = tpu.matmul %40, %41, %cst_54 {dimension_numbers = #tpu.dot_dimension_numbers<[1], [0], [0], [1], [0, 0, 1, 1], [], []>} : vector<2x128xf32>, vector<128x64xf32>, vector<2x64xf32> -> vector<2x64xf32>
    %c0_55 = arith.constant 0 : index
    %c0_56 = arith.constant 0 : index
    %43 = vector.load %arg6[%c0_55, %c0_56] : memref<1x64xf32, #tpu.memory_space<vmem>>, vector<1x64xf32>
    %44 = vector.broadcast %43 : vector<1x64xf32> to vector<2x64xf32>
    %45 = arith.addf %42, %44 : vector<2x64xf32>
    %cst_57 = arith.constant 0.000000e+00 : f32
    %46 = vector.broadcast %cst_57 : f32 to vector<2x64xf32>
    %47 = arith.maximumf %45, %46 : vector<2x64xf32>
    %c0_58 = arith.constant 0 : index
    %c0_59 = arith.constant 0 : index
    %48 = vector.load %arg7[%c0_58, %c0_59] : memref<1x64xf32, #tpu.memory_space<vmem>>, vector<1x64xf32>
    %49 = vector.broadcast %48 : vector<1x64xf32> to vector<2x64xf32>
    %50 = arith.mulf %47, %49 : vector<2x64xf32>
    %cst_60 = arith.constant dense<0.000000e+00> : vector<2xf32>
    %51 = vector.multi_reduction <add>, %50, %cst_60 [1] : vector<2x64xf32> to vector<2xf32>
    %52 = vector.shape_cast %51 : vector<2xf32> to vector<2x1xf32>
    %c0_61 = arith.constant 0 : index
    %c0_62 = arith.constant 0 : index
    %53 = vector.load %arg8[%c0_61, %c0_62] : memref<1x1xf32, #tpu.memory_space<vmem>>, vector<1x1xf32>
    %54 = vector.broadcast %53 : vector<1x1xf32> to vector<2x1xf32>
    %55 = arith.addf %52, %54 : vector<2x1xf32>
    %c0_63 = arith.constant 0 : index
    %c0_64 = arith.constant 0 : index
    %56 = vector.load %arg9[%c0_63, %c0_64] : memref<2x1xf32, #tpu.memory_space<vmem>>, vector<2x1xf32>
    tpu.vector_store %arg9[%c0_63, %c0_64], %55 {strides = array<i32>} : memref<2x1xf32, #tpu.memory_space<vmem>>, vector<2x1xf32>,
    return
  }
}

</mosaic_0001>

<bundles_post_ra>
// kernel: tpu_custom_call.1
= control target key start
LH: loop header
LB: loop body
LE: loop exit
PB: predicated region body
PF: predicated region fallthrough
CT: control target
= control target key end

     0   :  { %s1022_s0 = inlined_call_operand.vmem [shape: f32[2,13,16], index: 0, kind: input, shape index: {}]   ;;  %s1023_s1 = inlined_call_operand.hbm [shape: f32[39,64], index: 1, kind: input, shape index: {}]   ;;  %s1024_s2 = inlined_call_operand.vmem [shape: f32[1,64], index: 2, kind: input, shape index: {}]   ;;  %s1025_s3 = inlined_call_operand.vmem [shape: f32[192,128], index: 3, kind: input, shape index: {}]   ;;  %s1026_s4 = inlined_call_operand.vmem [shape: f32[1,128], index: 4, kind: input, shape index: {}]   ;;  %s1027_s5 = inlined_call_operand.vmem [shape: f32[128,64], index: 5, kind: input, shape index: {}]   ;;  %s1028_s6 = inlined_call_operand.vmem [shape: f32[1,64], index: 6, kind: input, shape index: {}]   ;;  %s1029_s7 = inlined_call_operand.vmem [shape: f32[1,64], index: 7, kind: input, shape index: {}]   ;;  %s1030_s8 = inlined_call_operand.<no memory space> [shape: f32[1,1], index: 8, kind: input, shape index: {}]   ;;  %s1031_s9 = inlined_call_operand.vmem [shape: f32[2,1], index: 9, kind: output, shape index: {}]  }
   0x1   :  { %v14_v0 = vstv %s1030_s8 }
   0x2   :  { %15 = vst [vmem:[#allocation4] sm:$0x1] %v14_v0 }
   0x3   :  { %16 = vsyncpa [#allocation6], 0  ;;  %s734_s11 = smov [#allocation5]  }
   0x4   :  { %s24_s12 = sshll.u32 %s734_s11, 4  ;;  %s25_s12 = int_to_ptr.vmem [resolvable:$true] %s24_s12 }
   0x5   :  { %s720_s13 = scalar_lea.vmem %s25_s12, 640  ;;  %p725_p1 = scmp.lt.s32.totalorder %s25_s12, %s25_s12 }
   0x6   :  { %p721_p0 = scmp.ne.s32.totalorder %s25_s12, %s720_s13  ;;  %p726_p2 = scmp.lt.s32.totalorder %s720_s13, %s720_s13 }
   0x8   :  { %p727_p3 = por %p726_p2, %p725_p1 }
   0xa   :  { %p728_p4 = pnand %p727_p3, %p721_p0 }
   0xc   :  { %731 = shalt.err (!%p728_p4)
}
   0xd   :  { %s735_s14 = smov 128   ;;  %s736_s15 = smov 8  }
   0xe   :  { %30 = dma.hbm_to_vmem [thread:$0]  %s1023_s1, 640, %s25_s12, [#allocation6], %s735_s14, %s735_s14, %s736_s15  }
   0xf   :  { %732 = dma.done.wait [#allocation6], 640  }
  0x10   :  { %733 = vsyncadd [#allocation6], 4294966656  ;;  %vm116_vm0 = vcmask 98304   ;;  %v737_v1 = vmov 0.0   ;;  %v50_v2 = vld [vmem:[%s1022_s0 + $0x10] sm:$0xff]  ;;  %v48_v3 = vld [vmem:[%s1022_s0] sm:$0xff] }
  0x11   :  { %120 = vst.msk [vmem:[#allocation2 + $0x29] sm:$0x1] %vm116_vm0, %v737_v1  ;;  %117 = vst.msk [vmem:[#allocation2] sm:$0x1] %vm116_vm0, %v737_v1  ;;  %382 = vmatprep.subr.mxu1 %v737_v1  ;;  %84 = vxpose.xlu1.b32.start [1/2] (short) (narrow) %v50_v2, 16  ;;  %vm204_vm1 = vcmask 1046528  }
  0x12   :  { %118 = vst.msk [vmem:[#allocation2 + $0x18] sm:$0x1] %vm116_vm0, %v737_v1  ;;  %119 = vst.msk [vmem:[#allocation2 + $0x11] sm:$0x1] %vm116_vm0, %v737_v1  ;;  %52 = vxpose.xlu0.b32.start [1/2] (short) (narrow) %v48_v3, 16  ;;  %vm121_vm2 = vcmask 105472  }
  0x13   :  { %v51_v4 = vld [vmem:[%s1022_s0 + $0x18] sm:$0x1f]  ;;  %v49_v5 = vld [vmem:[%s1022_s0 + $0x8] sm:$0x1f]  ;;  %v183_v6 = vld [vmem:[#allocation5 + $0x20] sm:$0x7f] }
  0x14   :  { %653 = vmatprep.subr.msk.mxu0 %vm204_vm1, %v183_v6  ;;  %v182_v9 = vld [vmem:[#allocation5 + $0x18] sm:$0xff]  ;;  %v181_v10 = vld [vmem:[#allocation5 + $0x10] sm:$0xff]  ;;  %v180_v13 = vld [vmem:[#allocation5 + $0x8] sm:$0xff]  ;;  %s738_s0 = smov 13   ;;  %s739_s24 = smov 26   ;;  %vm174_vm3 = vcmask 211968  }
  0x15   :  { %85 = vxpose.xlu1.b32.end [2/2] (short) (narrow) %v51_v4, 16  ;;  %654 = vmatpush3.msk.msra.mxu0 %vm204_vm1, %v183_v6  ;;  %v179_v14 = vld [vmem:[#allocation5] sm:$0xff]  ;;  %vm191_vm4 = vcmask 318464   ;;  %vm297_vm5 = vcmask 516096   ;;  %v354_v43 = vld [vmem:[%s1025_s3 + $0x78] sm:$0xff]  ;;  %v353_v44 = vld [vmem:[%s1025_s3 + $0x70] sm:$0xff] }
  0x16   :  { %53 = vxpose.xlu0.b32.end [2/2] (short) (narrow) %v49_v5, 16  ;;  %655 = vmatprep.subr.mxu0 %v182_v9  ;;  %298 = vst.msk [vmem:[#allocation3] sm:$0x1] %vm297_vm5, %v737_v1  ;;  %299 = vst.msk [vmem:[#allocation3 + $0x18] sm:$0x1] %vm297_vm5, %v737_v1  ;;  %v352_v45 = vld [vmem:[%s1025_s3 + $0x68] sm:$0xff] }
  0x17   :  { %656 = vmatpush3.msra.mxu0 %v182_v9  ;;  %300 = vst.msk [vmem:[#allocation3 + $0x11] sm:$0x1] %vm297_vm5, %v737_v1  ;;  %301 = vst.msk [vmem:[#allocation3 + $0x29] sm:$0x1] %vm297_vm5, %v737_v1  ;;  %383 = vmatpush1.msra.mxu1 %v354_v43  ;;  %v351_v46 = vld [vmem:[%s1025_s3 + $0x60] sm:$0xff]  ;;  %v350_v47 = vld [vmem:[%s1025_s3 + $0x58] sm:$0xff] }
  0x18   :  { %657 = vmatprep.subr.mxu0 %v181_v10  ;;  %384 = vmatprep.subr.mxu1 %v737_v1  ;;  %v349_v48 = vld [vmem:[%s1025_s3 + $0x50] sm:$0xff]  ;;  %v348_v49 = vld [vmem:[%s1025_s3 + $0x48] sm:$0xff]  ;;  %v347_v50 = vld [vmem:[%s1025_s3 + $0x40] sm:$0xff]  ;;  %vm302_vm6 = vcmask 523264   ;;  %vm741_vm7 = vmmov 0   ;;  %vm512_vm8 = vcmask 1041409  }
  0x19   :  { %658 = vmatpush3.msra.mxu0 %v181_v10  ;;  %385 = vmatpush1.msra.mxu1 %v353_v44  ;;  %v346_v51 = vld [vmem:[%s1025_s3 + $0x38] sm:$0xff]  ;;  %v345_v52 = vld [vmem:[%s1025_s3 + $0x30] sm:$0xff]  ;;  %v344_v53 = vld [vmem:[%s1025_s3 + $0x28] sm:$0xff]  ;;  %vm594_vm9 = vcmask 517120   ;;  %vm606_vm10 = vcmask 1024  }
  0x1a   :  { %659 = vmatprep.subr.mxu0 %v180_v13  ;;  %386 = vmatprep.subr.mxu1 %v737_v1  ;;  %v343_v54 = vld [vmem:[%s1025_s3 + $0x20] sm:$0xff]  ;;  %v342_v55 = vld [vmem:[%s1025_s3 + $0x18] sm:$0xff]  ;;  %v341_v56 = vld [vmem:[%s1025_s3 + $0x10] sm:$0xff] }
  0x1b   :  { %660 = vmatpush3.msra.mxu0 %v180_v13  ;;  %387 = vmatpush1.msra.mxu1 %v352_v45  ;;  %v340_v57 = vld [vmem:[%s1025_s3 + $0x8] sm:$0xff]  ;;  %v339_v58 = vld [vmem:[%s1025_s3] sm:$0xff]  ;;  %v362_v59 = vld [vmem:[%s1025_s3 + $0xb8] sm:$0xff] }
  0x1c   :  { %661 = vmatprep.subr.mxu0 %v179_v14  ;;  %388 = vmatprep.subr.mxu1 %v737_v1  ;;  %v361_v60 = vld [vmem:[%s1025_s3 + $0xb0] sm:$0xff]  ;;  %v360_v61 = vld [vmem:[%s1025_s3 + $0xa8] sm:$0xff]  ;;  %v359_v62 = vld [vmem:[%s1025_s3 + $0xa0] sm:$0xff] }
  0x1d   :  { %662 = vmatpush3.msra.mxu0 %v179_v14  ;;  %389 = vmatpush1.msra.mxu1 %v351_v46  ;;  %v358_v63 = vld [vmem:[%s1025_s3 + $0x98] sm:$0xff]  ;;  %v357_v0 = vld [vmem:[%s1025_s3 + $0x90] sm:$0xff]  ;;  %v613_v2 = vld [vmem:[%s1024_s2] ss:$0 sm:$0xff]  ;;  %s740_s2 = smov 64  }
  0x1e   :  { %669 = vmatprep.subr.mxu0 %v737_v1  ;;  %390 = vmatprep.subr.mxu1 %v737_v1  ;;  %v356_v3 = vld [vmem:[%s1025_s3 + $0x88] sm:$0xff]  ;;  %v355_v6 = vld [vmem:[%s1025_s3 + $0x80] sm:$0xff]  ;;  %v494_v45 = vld [vmem:[%s1027_s5 + $0x38] sm:$0xff] }
  0x1f   :  { %391 = vmatpush1.msra.mxu1 %v350_v47  ;;  %v496_v43 = vld [vmem:[%s1027_s5 + $0x48] sm:$0xff]  ;;  %v495_v44 = vld [vmem:[%s1027_s5 + $0x40] sm:$0xff]  ;;  %v493_v46 = vld [vmem:[%s1027_s5 + $0x30] sm:$0xff] }
  0x20   :  { %392 = vmatprep.subr.mxu1 %v737_v1  ;;  %v492_v47 = vld [vmem:[%s1027_s5 + $0x28] sm:$0xff] }
  0x21   :  { %393 = vmatpush1.msra.mxu1 %v349_v48  ;;  %v491_v48 = vld [vmem:[%s1027_s5 + $0x20] sm:$0xff] }
  0x22   :  { %394 = vmatprep.subr.mxu1 %v737_v1 }
  0x23   :  { %395 = vmatpush1.msra.mxu1 %v348_v49  ;;  %v490_v49 = vld [vmem:[%s1027_s5 + $0x18] sm:$0xff] }
  0x24   :  { %396 = vmatprep.subr.mxu1 %v737_v1 }
  0x25   :  { %397 = vmatpush1.msra.mxu1 %v347_v50  ;;  %v489_v50 = vld [vmem:[%s1027_s5 + $0x10] sm:$0xff] }
  0x26   :  { %398 = vmatprep.subr.mxu1 %v737_v1 }
  0x27   :  { %399 = vmatpush1.msra.mxu1 %v346_v51  ;;  %v488_v51 = vld [vmem:[%s1027_s5 + $0x8] sm:$0xff] }
  0x28   :  { %400 = vmatprep.subr.mxu1 %v737_v1 }
  0x29   :  { %401 = vmatpush1.msra.mxu1 %v345_v52  ;;  %v487_v52 = vld [vmem:[%s1027_s5] sm:$0xff] }
  0x2a   :  { %402 = vmatprep.subr.mxu1 %v737_v1 }
  0x2b   :  { %403 = vmatpush1.msra.mxu1 %v344_v53  ;;  %v619_v53 = vld [vmem:[%s1026_s4] ss:$0 sm:$0xff] }
  0x2c   :  { %404 = vmatprep.subr.mxu1 %v737_v1 }
  0x2d   :  { %405 = vmatpush1.msra.mxu1 %v343_v54 }
  0x2e   :  { %406 = vmatprep.subr.mxu1 %v737_v1 }
  0x2f   :  { %407 = vmatpush1.msra.mxu1 %v342_v55 }
  0x30   :  { %408 = vmatprep.subr.mxu1 %v737_v1 }
  0x31   :  { %409 = vmatpush1.msra.mxu1 %v341_v56 }
  0x32   :  { %410 = vmatprep.subr.mxu1 %v737_v1 }
  0x33   :  { %411 = vmatpush1.msra.mxu1 %v340_v57 }
  0x34   :  { %412 = vmatprep.subr.mxu1 %v737_v1 }
  0x35   :  { %413 = vmatpush1.msra.mxu1 %v339_v58 }
  0x36   :  { %430 = vmatprep.subr.mxu1 %v737_v1 }
  0x37   :  { %431 = vmatpush2.msra.mxu1 %v362_v59 }
  0x38   :  { %432 = vmatprep.subr.mxu1 %v737_v1 }
  0x39   :  { %433 = vmatpush2.msra.mxu1 %v361_v60 }
  0x3a   :  { %434 = vmatprep.subr.mxu1 %v737_v1 }
  0x3b   :  { %435 = vmatpush2.msra.mxu1 %v360_v61 }
  0x3c   :  { %436 = vmatprep.subr.mxu1 %v737_v1 }
  0x3d   :  { %437 = vmatpush2.msra.mxu1 %v359_v62 }
  0x3e   :  { %438 = vmatprep.subr.mxu1 %v737_v1 }
  0x3f   :  { %439 = vmatpush2.msra.mxu1 %v358_v63 }
  0x40   :  { %440 = vmatprep.subr.mxu1 %v737_v1 }
  0x41   :  { %441 = vmatpush2.msra.mxu1 %v357_v0 }
  0x42   :  { %442 = vmatprep.subr.mxu1 %v737_v1 }
  0x43   :  { %443 = vmatpush2.msra.mxu1 %v356_v3 }
  0x44   :  { %444 = vmatprep.subr.mxu1 %v737_v1 }
  0x45   :  { %445 = vmatpush2.msra.mxu1 %v355_v6 }
  0x8d   :  { %v100_v7 = vpop.trf.xlu1 }
  0x8e   :  { %v68_v8 = vpop.trf.xlu0  ;;  %124 = vst.msk [vmem:[#allocation2 + $0x19] sm:$0xff] %vm121_vm2, %v100_v7 }
  0x8f   :  { %122 = vst.msk [vmem:[#allocation2 + $0x1] sm:$0xff] %vm121_vm2, %v68_v8 }
  0x91   :  { %v101_v11 = vpop.trf.xlu1 }
  0x92   :  { %v69_v12 = vpop.trf.xlu0  ;;  %125 = vst.msk [vmem:[#allocation2 + $0x21] sm:$0xff] %vm121_vm2, %v101_v11 }
  0x93   :  { %123 = vst.msk [vmem:[#allocation2 + $0x9] sm:$0xff] %vm121_vm2, %v69_v12 }
  0x95   :  { %v132_v21 = vld [vmem:[#allocation2 + $0x19] sm:$0xff] }
  0x96   :  { %v130_v15 = vld [vmem:[#allocation2 + $0x1] sm:$0xff]  ;;  %v128_v36 = vld [vmem:[#allocation2 + $0x18] sm:$0xff] }
  0x97   :  { %142 = vrot.lane.b32.xlu0 %v130_v15, %s738_s0  ;;  %v126_v25 = vld [vmem:[#allocation2] sm:$0xff] }
  0x99   :  { %v133_v16 = vld [vmem:[#allocation2 + $0x21] sm:$0xff] }
  0x9a   :  { %v131_v17 = vld [vmem:[#allocation2 + $0x9] sm:$0xff]  ;;  %v136_v22 = vld [vmem:[#allocation2 + $0x1a] sm:$0xff] }
  0x9b   :  { %148 = vrot.lane.b32.xlu0 %v133_v16, %s738_s0  ;;  %144 = vrot.lane.b32.xlu1 %v131_v17, %s738_s0  ;;  %v137_v18 = vld [vmem:[#allocation2 + $0x22] sm:$0xff]  ;;  %v135_v20 = vld [vmem:[#allocation2 + $0xa] sm:$0xff] }
  0x9c   :  { %v134_v19 = vld [vmem:[#allocation2 + $0x2] sm:$0xff] }
  0x9d   :  { %v127_v29 = vld [vmem:[#allocation2 + $0x8] sm:$0xff]  ;;  %v129_v37 = vld [vmem:[#allocation2 + $0x20] sm:$0xff] }
  0x9f   :  { %164 = vrot.lane.b32.xlu0 %v137_v18, %s739_s24  ;;  %158 = vrot.lane.b32.xlu1 %v134_v19, %s739_s24 }
  0xa3   :  { %160 = vrot.lane.b32.xlu1 %v135_v20, %s739_s24 }
  0xa7   :  { %146 = vrot.lane.b32.xlu1 %v132_v21, %s738_s0 }
  0xab   :  { %162 = vrot.lane.b32.xlu1 %v136_v22, %s739_s24 }
 0x109   :  { %v143_v24 = vpop.permute.xlu0 %142 }
 0x10a   :  { %v170_v26 = vsel %vm121_vm2, %v126_v25, %v143_v24 }
 0x10d   :  { %v145_v23 = vpop.permute.xlu1 %144  ;;  %v149_v32 = vpop.permute.xlu0 %148 }
 0x10e   :  { %v171_v30 = vsel %vm121_vm2, %v127_v29, %v145_v23  ;;  %v173_v40 = vsel %vm121_vm2, %v129_v37, %v149_v32  ;;  %v502_v37 = vld [vmem:[%s1027_s5 + $0x78] sm:$0xff] }
 0x111   :  { %v159_v27 = vpop.permute.xlu1 %158  ;;  %v165_v35 = vpop.permute.xlu0 %164 }
 0x112   :  { %v175_v28 = vsel %vm174_vm3, %v170_v26, %v159_v27  ;;  %v178_v42 = vsel %vm174_vm3, %v173_v40, %v165_v35  ;;  %v499_v40 = vld [vmem:[%s1027_s5 + $0x60] sm:$0xff] }
 0x113   :  { %663 = vmatprep.mubr.msk.f32.mxu0 %vm191_vm4, %v175_v28 }
 0x115   :  { %v161_v31 = vpop.permute.xlu1 %160 }
 0x116   :  { %v176_v33 = vsel %vm174_vm3, %v171_v30, %v161_v31 }
 0x117   :  { %664 = vmatmul.mubr.msk.f32.vlgmr.msra.gmra.mxu0 %vm191_vm4, %v176_v33 }
 0x118   :  { %670 = vmatpush3.msra.mxu0 %v502_v37 }
 0x119   :  { %v147_v34 = vpop.permute.xlu1 %146  ;;  %671 = vmatprep.subr.mxu0 %v737_v1 }
 0x11a   :  { %v172_v38 = vsel %vm121_vm2, %v128_v36, %v147_v34 }
 0x11d   :  { %v163_v39 = vpop.permute.xlu1 %162 }
 0x11e   :  { %v177_v41 = vsel %vm174_vm3, %v172_v38, %v163_v39  ;;  %v501_v38 = vld [vmem:[%s1027_s5 + $0x70] sm:$0xff]  ;;  %v500_v39 = vld [vmem:[%s1027_s5 + $0x68] sm:$0xff] }
 0x11f   :  { %666 = vmatprep.mubr.msk.f32.mxu0 %vm191_vm4, %v177_v41  ;;  %672 = vmatpush3.msra.mxu0 %v501_v38  ;;  %v498_v41 = vld [vmem:[%s1027_s5 + $0x58] sm:$0xff] }
 0x120   :  { %667 = vmatmul.mubr.msk.f32.gmra.mxu0 %vm191_vm4, %v178_v42  ;;  %673 = vmatprep.subr.mxu0 %v737_v1  ;;  %v497_v42 = vld [vmem:[%s1027_s5 + $0x50] sm:$0xff] }
 0x121   :  { %674 = vmatpush3.msra.mxu0 %v500_v39  ;;  %701 = vmatprep.mubr.msk.f32.mxu0 %vm741_vm7, %v737_v1 }
 0x122   :  { %675 = vmatprep.subr.mxu0 %v737_v1 }
 0x123   :  { %676 = vmatpush3.msra.mxu0 %v499_v40 }
 0x124   :  { %677 = vmatprep.subr.mxu0 %v737_v1 }
 0x125   :  { %678 = vmatpush3.msra.mxu0 %v498_v41 }
 0x126   :  { %679 = vmatprep.subr.mxu0 %v737_v1 }
 0x127   :  { %680 = vmatpush3.msra.mxu0 %v497_v42 }
 0x128   :  { %681 = vmatprep.subr.mxu0 %v737_v1 }
 0x129   :  { %682 = vmatpush3.msra.mxu0 %v496_v43 }
 0x12a   :  { %683 = vmatprep.subr.mxu0 %v737_v1 }
 0x12b   :  { %684 = vmatpush3.msra.mxu0 %v495_v44 }
 0x12c   :  { %685 = vmatprep.subr.mxu0 %v737_v1 }
 0x12d   :  { %686 = vmatpush3.msra.mxu0 %v494_v45 }
 0x12e   :  { %687 = vmatprep.subr.mxu0 %v737_v1 }
 0x12f   :  { %688 = vmatpush3.msra.mxu0 %v493_v46 }
 0x130   :  { %689 = vmatprep.subr.mxu0 %v737_v1 }
 0x131   :  { %690 = vmatpush3.msra.mxu0 %v492_v47 }
 0x132   :  { %691 = vmatprep.subr.mxu0 %v737_v1 }
 0x133   :  { %692 = vmatpush3.msra.mxu0 %v491_v48 }
 0x134   :  { %693 = vmatprep.subr.mxu0 %v737_v1 }
 0x135   :  { %694 = vmatpush3.msra.mxu0 %v490_v49 }
 0x136   :  { %695 = vmatprep.subr.mxu0 %v737_v1 }
 0x137   :  { %696 = vmatpush3.msra.mxu0 %v489_v50 }
 0x138   :  { %697 = vmatprep.subr.mxu0 %v737_v1 }
 0x139   :  { %698 = vmatpush3.msra.mxu0 %v488_v51 }
 0x13a   :  { %699 = vmatprep.subr.mxu0 %v737_v1 }
 0x13b   :  { %700 = vmatpush3.msra.mxu0 %v487_v52 }
 0x1d7   :  { %v665_v4 = vpop.f32.mrf.mxu0 }
 0x1d8   :  { %v280_v5 = vadd.f32 %v665_v4, %v613_v2 }
 0x1d9   :  { %v274_v7 = vpop.f32.mrf.mxu0 }
 0x1da   :  { %v294_v8 = vmax.f32 %v280_v5, 0.0  ;;  %v275_v9 = vadd.f32 %v613_v2, %v274_v7 }
 0x1dc   :  { %304 = vst.msk [vmem:[#allocation3 + $0x9] sm:$0xff] %vm302_vm6, %v294_v8  ;;  %v293_v10 = vmax.f32 %v275_v9, 0.0 }
 0x1de   :  { %303 = vst.msk [vmem:[#allocation3 + $0x1] sm:$0xff] %vm302_vm6, %v293_v10 }
 0x1e0   :  { %v668_v11 = vpop.f32.mrf.mxu0 }
 0x1e1   :  { %v290_v12 = vadd.f32 %v668_v11, %v613_v2 }
 0x1e2   :  { %v284_v13 = vpop.f32.mrf.mxu0 }
 0x1e3   :  { %v296_v14 = vmax.f32 %v290_v12, 0.0  ;;  %v285_v15 = vadd.f32 %v613_v2, %v284_v13  ;;  %v312_v16 = vld [vmem:[#allocation3 + $0x9] sm:$0xff] }
 0x1e4   :  { %325 = vrot.lane.b32.xlu0 %v312_v16, %s740_s2  ;;  %v316_v26 = vld [vmem:[#allocation3 + $0xa] sm:$0xff] }
 0x1e5   :  { %306 = vst.msk [vmem:[#allocation3 + $0x21] sm:$0xff] %vm302_vm6, %v296_v14  ;;  %v295_v17 = vmax.f32 %v285_v15, 0.0  ;;  %v315_v18 = vld [vmem:[#allocation3 + $0x2] sm:$0xff] }
 0x1e6   :  { %v311_v19 = vld [vmem:[#allocation3 + $0x1] sm:$0xff]  ;;  %620 = vmatprep.mubr.msk.f32.mxu1 %vm302_vm6, %v315_v18 }
 0x1e7   :  { %323 = vrot.lane.b32.xlu1 %v311_v19, %s740_s2  ;;  %305 = vst.msk [vmem:[#allocation3 + $0x19] sm:$0xff] %vm302_vm6, %v295_v17  ;;  %v307_v23 = vld [vmem:[#allocation3] sm:$0xff]  ;;  %v308_v27 = vld [vmem:[#allocation3 + $0x8] sm:$0xff] }
 0x1ec   :  { %v314_v20 = vld [vmem:[#allocation3 + $0x21] sm:$0xff] }
 0x1ed   :  { %329 = vrot.lane.b32.xlu0 %v314_v20, %s740_s2  ;;  %v318_v34 = vld [vmem:[#allocation3 + $0x22] sm:$0xff] }
 0x1ee   :  { %v313_v21 = vld [vmem:[#allocation3 + $0x19] sm:$0xff] }
 0x1ef   :  { %327 = vrot.lane.b32.xlu1 %v313_v21, %s740_s2  ;;  %v317_v29 = vld [vmem:[#allocation3 + $0x1a] sm:$0xff] }
 0x1f0   :  { %v309_v31 = vld [vmem:[#allocation3 + $0x18] sm:$0xff]  ;;  %v310_v35 = vld [vmem:[#allocation3 + $0x20] sm:$0xff] }
 0x256   :  { %v326_v25 = vpop.permute.xlu0 %325 }
 0x257   :  { %v336_v28 = vsel %vm302_vm6, %v308_v27, %v326_v25  ;;  %v625_v27 = vld [vmem:[%s1029_s7] ss:$0 sm:$0xff] }
 0x259   :  { %v324_v22 = vpop.permute.xlu1 %323 }
 0x25a   :  { %v335_v24 = vsel %vm302_vm6, %v307_v23, %v324_v22  ;;  %v624_v23 = vld [vmem:[%s1028_s6] ss:$0 sm:$0xff] }
 0x25b   :  { %447 = vmatmul.mubr.f32.vlgmr.msra.gmra.mxu1 %v335_v24 }
 0x25c   :  { %621 = vmatprep.mubr.msk.f32.mxu1 %vm302_vm6, %v316_v26 }
 0x25f   :  { %452 = vmatmul.mubr.f32.gmra.mxu1 %v336_v28  ;;  %v330_v33 = vpop.permute.xlu0 %329 }
 0x260   :  { %622 = vmatprep.mubr.msk.f32.mxu1 %vm302_vm6, %v317_v29  ;;  %v338_v36 = vsel %vm302_vm6, %v310_v35, %v330_v33 }
 0x261   :  { %v328_v30 = vpop.permute.xlu1 %327 }
 0x262   :  { %v337_v32 = vsel %vm302_vm6, %v309_v31, %v328_v30  ;;  %v626_v31 = vld [vmem:[#allocation4] ss:$0 sm:$0xff] }
 0x263   :  { %457 = vmatmul.mubr.f32.gmra.mxu1 %v337_v32 }
 0x264   :  { %623 = vmatprep.mubr.msk.f32.mxu1 %vm302_vm6, %v318_v34 }
 0x267   :  { %462 = vmatmul.mubr.f32.gmra.mxu1 %v338_v36 }
 0x31b   :  { %v448_v54 = vpop.f32.mrf.mxu1 }
 0x31c   :  { %v449_v56 = vadd.f32 %v619_v53, %v448_v54 }
 0x31d   :  { %v450_v55 = vpop.f32.mrf.mxu1 }
 0x31e   :  { %v467_v60 = vmax.f32 %v449_v56, 0.0 }
 0x31f   :  { %v453_v57 = vpop.f32.mrf.mxu1 }
 0x320   :  { %v454_v58 = vadd.f32 %v619_v53, %v453_v57 }
 0x321   :  { %v455_v59 = vpop.f32.mrf.mxu1 }
 0x322   :  { %v468_v61 = vmax.f32 %v454_v58, 0.0 }
 0x323   :  { %v458_v63 = vpop.f32.mrf.mxu1 }
 0x324   :  { %v471_v62 = vadd.f32 %v468_v61, %v467_v60  ;;  %v459_v3 = vadd.f32 %v619_v53, %v458_v63 }
 0x325   :  { %v460_v2 = vpop.f32.mrf.mxu1 }
 0x326   :  { %v472_v0 = vrot.slane %v471_v62, 4  ;;  %v469_v8 = vmax.f32 %v459_v3, 0.0 }
 0x327   :  { %v463_v1 = vpop.f32.mrf.mxu1 }
 0x328   :  { %v473_v4 = vadd.f32 %v472_v0, %v471_v62  ;;  %v464_v5 = vadd.f32 %v619_v53, %v463_v1 }
 0x329   :  { %v465_v6 = vpop.f32.mrf.mxu1 }
 0x32a   :  { %v474_v7 = vrot.slane %v473_v4, 2  ;;  %v470_v9 = vmax.f32 %v464_v5, 0.0 }
 0x32c   :  { %v478_v10 = vadd.f32 %v470_v9, %v469_v8  ;;  %v475_v11 = vadd.f32 %v474_v7, %v473_v4 }
 0x32e   :  { %v479_v12 = vrot.slane %v478_v10, 4  ;;  %v476_v14 = vrot.slane %v475_v11, 1 }
 0x330   :  { %v480_v13 = vadd.f32 %v479_v12, %v478_v10  ;;  %v477_v17 = vadd.f32 %v476_v14, %v475_v11 }
 0x332   :  { %v481_v15 = vrot.slane %v480_v13, 2  ;;  %v485_v20 = vmul.f32 0.0625, %v477_v17 }
 0x334   :  { %v482_v16 = vadd.f32 %v481_v15, %v480_v13 }
 0x336   :  { %v483_v18 = vrot.slane %v482_v16, 1 }
 0x338   :  { %v484_v19 = vadd.f32 %v483_v18, %v482_v16 }
 0x33a   :  { %v486_v21 = vmul.f32 0.0625, %v484_v19 }
 0x33c   :  { %v513_v22 = vsel %vm512_vm8, %v486_v21, %v485_v20 }
 0x33d   :  { %702 = vmatmul.mubr.f32.vlgmr.msra.gmra.mxu0 %v513_v22 }
 0x3fd   :  { %v581_v24 = vpop.f32.mrf.mxu0 }
 0x3fe   :  { %v582_v25 = vadd.f32 %v624_v23, %v581_v24 }
 0x3ff   :  { %v703_v26 = vpop.f32.mrf.mxu0 }
 0x400   :  { %v585_v28 = vmax.f32 %v582_v25, 0.0 }
 0x402   :  { %v593_v29 = vmul.f32 %v625_v27, %v585_v28 }
 0x404   :  { %v595_v30 = vsel %vm594_vm9, %v593_v29, 0.0 }
 0x405   :  { %596 = vadd.xlane.f32.xlu1 %v595_v30 }
 0x48e   :  { %v597_v32 = vpop.xlane.xlu1 %596 }
 0x48f   :  { %v605_v33 = vadd.f32 %v626_v31, %v597_v32 }
 0x491   :  { %607 = vst.msk [vmem:[%s1031_s9] sm:$0x3] %vm606_vm10, %v605_v33 }
 0x492   :  { %612 = vsyncpa [#allocation6], 1 }

</bundles_post_ra>
